<compile_context>
chip_gen: v7x
topology: tpu7x:2x2x1
jax: 0.10.0
libtpu: 0.0.40
codegen_flags: <defaults>
</compile_context>

<pallas_src>
import functools

import jax
import jax.numpy as jnp
import numpy as np
from jax.experimental import pallas as pl
from jax.experimental.pallas import tpu as pltpu


def lifting_kernel(x_ref, w_ref, b_ref, o_ref):
    # x_ref: (C_in, TN)  lane-dense slab of B*H*W pixel columns
    # w_ref: (C_out, C_in)  resident weight
    # b_ref: (C_out, 1)     resident bias
    # o_ref: (C_out, TN)    lane-dense output slab
    acc = jnp.dot(w_ref[...], x_ref[...], preferred_element_type=jnp.float32)
    o_ref[...] = (acc + b_ref[...]).astype(o_ref.dtype)


@functools.partial(jax.jit, static_argnames=("tn",))
def lifting(x, weight, bias, *, tn=256):
    """1x1 Conv2d ("Lifting") forward.

    x:      (B, C_in, H, W) float32 (NCHW, same as the torch module)
    weight: (C_out, C_in, 1, 1) float32 (torch Conv2d weight layout)
    bias:   (C_out,) float32
    returns (B, C_out, H, W) float32
    """
    B, C_in, H, W = x.shape
    C_out = weight.shape[0]
    M = B * H * W

    # Channel-major slab: (C_in, B*H*W).  The lane axis carries all pixels of
    # all batch images so every load/store is a full 128-lane vector op.
    x2 = jnp.transpose(x, (1, 0, 2, 3)).reshape(C_in, M)

    # Pad the lane axis to a multiple of tn so every block is full-size.
    Mp = pl.cdiv(M, tn) * tn
    if Mp != M:
        x2 = jnp.pad(x2, ((0, 0), (0, Mp - M)))

    w2 = weight.reshape(C_out, C_in).astype(jnp.float32)
    b2 = bias.reshape(C_out, 1).astype(jnp.float32)

    out = pl.pallas_call(
        lifting_kernel,
        out_shape=jax.ShapeDtypeStruct((C_out, Mp), jnp.float32),
        grid_spec=pltpu.PrefetchScalarGridSpec(
            num_scalar_prefetch=0,
            grid=(Mp // tn,),
            in_specs=[
                pl.BlockSpec((C_in, tn), lambda n: (0, n)),    # streamed pixels
                pl.BlockSpec((C_out, C_in), lambda n: (0, 0)), # resident weight
                pl.BlockSpec((C_out, 1), lambda n: (0, 0)),    # resident bias
            ],
            out_specs=pl.BlockSpec((C_out, tn), lambda n: (0, n)),
        ),
        compiler_params=pltpu.CompilerParams(
            dimension_semantics=("parallel",)),
    )(x2, w2, b2)

    out = out[:, :M].reshape(C_out, B, H, W)
    return jnp.transpose(out, (1, 0, 2, 3))


def lifting_ref(x, weight, bias):
    """Pure-JAX reference of the torch forward (1x1 conv + bias)."""
    w2 = weight.reshape(weight.shape[0], weight.shape[1])
    return jnp.einsum("oi,bihw->bohw", w2, x) + bias[None, :, None, None]


if __name__ == "__main__":
    batch, in_channels, out_channels, H, W = 2, 4, 32, 16, 16

    key = jax.random.PRNGKey(0)
    kx, kw, kb = jax.random.split(key, 3)
    x = jax.random.normal(kx, (batch, in_channels, H, W), jnp.float32)
    scale = 1.0 / np.sqrt(in_channels)          # ~torch Conv2d default init scale
    weight = scale * jax.random.normal(
        kw, (out_channels, in_channels, 1, 1), jnp.float32)
    bias = scale * jax.random.normal(kb, (out_channels,), jnp.float32)

    out = jax.block_until_ready(lifting(x, weight, bias))
    ref = jax.block_until_ready(lifting_ref(x, weight, bias))

    assert out.shape == (batch, out_channels, H, W)
    assert np.allclose(np.asarray(out), np.asarray(ref), rtol=1e-4, atol=1e-5), \
        "Pallas Lifting does not match reference"

    print("KERNEL_OK")
</pallas_src>

<mosaic_0001>
module attributes {stable_mosaic.version = 11 : i64} {
  func.func @lifting_kernel(%arg0: i32, %arg1: memref<4x256xf32, #tpu.memory_space<vmem>>, %arg2: memref<32x4xf32, #tpu.memory_space<vmem>>, %arg3: memref<32x1xf32, #tpu.memory_space<vmem>>, %arg4: memref<32x256xf32, #tpu.memory_space<vmem>>) attributes {dimension_semantics = [#tpu.dimension_semantics<parallel>], iteration_bounds = array<i64: 2>, scalar_prefetch = 0 : i64, scratch_operands = 0 : i64, tpu.core_type = #tpu.core_type<tc>, window_params = [{transform_indices = @transform_0, window_bounds = array<i64: 4, 256>}, {pipeline_mode = #tpu.pipeline_mode<synchronous>, transform_indices = @transform_1, window_bounds = array<i64: 32, 4>}, {pipeline_mode = #tpu.pipeline_mode<synchronous>, transform_indices = @transform_2, window_bounds = array<i64: 32, 1>}, {transform_indices = @transform_3, window_bounds = array<i64: 32, 256>}]} {
    %c0 = arith.constant 0 : index
    %c0_0 = arith.constant 0 : index
    %0 = vector.load %arg2[%c0, %c0_0] : memref<32x4xf32, #tpu.memory_space<vmem>>, vector<32x4xf32>
    %c0_1 = arith.constant 0 : index
    %c0_2 = arith.constant 0 : index
    %1 = vector.load %arg1[%c0_1, %c0_2] : memref<4x256xf32, #tpu.memory_space<vmem>>, vector<4x256xf32>
    %cst = arith.constant dense<0.000000e+00> : vector<32x256xf32>
    %2 = tpu.matmul %0, %1, %cst {dimension_numbers = #tpu.dot_dimension_numbers<[1], [0], [0], [1], [0, 0, 1, 1], [], []>} : vector<32x4xf32>, vector<4x256xf32>, vector<32x256xf32> -> vector<32x256xf32>
    %c0_3 = arith.constant 0 : index
    %c0_4 = arith.constant 0 : index
    %3 = vector.load %arg3[%c0_3, %c0_4] : memref<32x1xf32, #tpu.memory_space<vmem>>, vector<32x1xf32>
    %4 = vector.broadcast %3 : vector<32x1xf32> to vector<32x256xf32>
    %5 = arith.addf %2, %4 : vector<32x256xf32>
    %c0_5 = arith.constant 0 : index
    %c0_6 = arith.constant 0 : index
    %6 = vector.load %arg4[%c0_5, %c0_6] : memref<32x256xf32, #tpu.memory_space<vmem>>, vector<32x256xf32>
    tpu.vector_store %arg4[%c0_5, %c0_6], %5 {strides = array<i32>} : memref<32x256xf32, #tpu.memory_space<vmem>>, vector<32x256xf32>,
    return
  }
  func.func @transform_0(%arg0: i32) -> (i32, i32) {
    %c0_i32 = arith.constant 0 : i32
    %c0_i32_0 = arith.constant 0 : i32
    return %c0_i32, %arg0 : i32, i32
  }
  func.func @transform_1(%arg0: i32) -> (i32, i32) {
    %c0_i32 = arith.constant 0 : i32
    %c0_i32_0 = arith.constant 0 : i32
    %c0_i32_1 = arith.constant 0 : i32
    return %c0_i32, %c0_i32_0 : i32, i32
  }
  func.func @transform_2(%arg0: i32) -> (i32, i32) {
    %c0_i32 = arith.constant 0 : i32
    %c0_i32_0 = arith.constant 0 : i32
    %c0_i32_1 = arith.constant 0 : i32
    return %c0_i32, %c0_i32_0 : i32, i32
  }
  func.func @transform_3(%arg0: i32) -> (i32, i32) {
    %c0_i32 = arith.constant 0 : i32
    %c0_i32_0 = arith.constant 0 : i32
    return %c0_i32, %arg0 : i32, i32
  }
}

</mosaic_0001>

<bundles_post_ra>
// kernel: lifting.1
= control target key start
LH: loop header
LB: loop body
LE: loop exit
PB: predicated region body
PF: predicated region fallthrough
CT: control target
= control target key end

     0   :  { %s502_s12 = smov 0   ;;  %s504_s13 = smov 0   ;;  %s594_s0 = inlined_call_operand.vmem [shape: f32[4,512], index: 0, kind: input, shape index: {}]   ;;  %s595_s1 = inlined_call_operand.vmem [shape: f32[32,4], index: 1, kind: input, shape index: {}]   ;;  %s596_s2 = inlined_call_operand.vmem [shape: f32[32,1], index: 2, kind: input, shape index: {}]   ;;  %s597_s3 = inlined_call_operand.vmem [shape: f32[32,512], index: 3, kind: output, shape index: {}]  }
   0x1   :  { %s506_s14 = smov 0  }
   0x2 LB: > { %s515_s15 = sadd.s32 4294967295, %s478_s14   ;;  %s517_s16 = sadd.s32 1, %s478_s14   ;;  %s478_s14 = sphi %s506_s14, %s601_s14   ;;  %s474_s13 = sphi %s504_s13, %s600_s13   ;;  %s470_s12 = sphi %s502_s12, %s599_s12  }
   0x3   : > { %s85_s17 = ssub.s32 %s478_s14, %s517_s16  ;;  %s88_s18 = sadd.s32 1, %s474_s13 }
   0x4   : > { %p86_p0 = scmp.eq.s32.totalorder %s85_s17, 0  ;;  %p98_p1 = scmp.ne.s32.totalorder %s474_s13, %s470_s12 }
   0x5   : > { %p99_p2 = scmp.eq.s32.totalorder %s515_s15, 1  ;;  %p409_p3 = scmp.ge.s32.totalorder %s478_s14, 1 }
   0x6   : > { %s525_s19 = scalar_select %p86_p0, %s474_s13, %s88_s18  }
   0x7   : > { %p527_p4 = por %p99_p2, %p98_p1  ;;  %p138_p5 = scmp.lt.s32.totalorder %s478_s14, 3 }
   0x9   : > { %p139_p6 = pnand %p409_p3, %p138_p5 }
   0xa   : > { %s411_s21 = sshll.u32 (!%p139_p6), %s515_s15, 1  ;;  %v480_v0 = vmov (!%p139_p6), 0.0   ;;  %v175_v1 = vld [vmem:[%s596_s2 + $0x10] sm:$0xff] (!%p139_p6)  ;;  %v481_v2 = vmov (!%p139_p6), 0   ;;  %v173_v3 = vld [vmem:[%s596_s2] sm:$0xff] (!%p139_p6)  ;;  %v176_v4 = vld [vmem:[%s596_s2 + $0x18] sm:$0xff] (!%p139_p6) }
   0xb   : > { %142 = sbr.rel (%p139_p6) target bundleno = 255 (0xff), region = 32  ;;  %p162_p7 = scmp.lt.s32.totalorder (!%p139_p6), %s411_s21, 3  ;;  %281 = vmatprep.mubr.f32.mxu0 (!%p139_p6), %v480_v0  ;;  %293 = vmatprep.mubr.f32.mxu1 (!%p139_p6), %v480_v0  ;;  %v174_v5 = vld [vmem:[%s596_s2 + $0x8] sm:$0xff] (!%p139_p6)  ;;  %vm212_vm0 = vcmask (!%p139_p6), 1043456   ;;  %v168_v8 = vld [vmem:[%s595_s1] sm:$0xff] (!%p139_p6)  ;;  %vm199_vm1 = vcmask (!%p139_p6), 31744  }
   0xc   : > { %454 = vset.pattern.permute.xlu1 (!%p139_p6), %v481_v2  ;;  %453 = vset.pattern.permute.xlu0 (!%p139_p6), %v481_v2  ;;  %v170_v9 = vld [vmem:[%s595_s1 + $0x10] sm:$0xff] (!%p139_p6)  ;;  %v169_v10 = vld [vmem:[%s595_s1 + $0x8] sm:$0xff] (!%p139_p6)  ;;  %v171_v11 = vld [vmem:[%s595_s1 + $0x18] sm:$0xff] (!%p139_p6) }
   0xd   : > { %189 = vperm.xlu1 (!%p139_p6), %454, %v175_v1   ;;  %179 = vperm.xlu0 (!%p139_p6), %453, %v173_v3  }
  0x11   : > { %194 = vperm.xlu1 (!%p139_p6), %454, %v176_v4   ;;  %184 = vperm.xlu0 (!%p139_p6), %453, %v174_v5  }
  0x12   : > { %s603_s21 = smov (!%p162_p7, %s411_s21), 3 }
  0x13   : > { %s412_s30 = sshll.u32 %s603_s21, 2  ;;  %s158_s21 = sand.u32 1, %s470_s12  }
  0x14   : > { %s165_s6 = scalar_lea.vmem %s594_s0, %s412_s30  ;;  %s410_s22 = sshll.u32 %s158_s21, 6 }
  0x15   : > { %v172_v6 = vld [vmem:[%s165_s6] sm:$0xff]  ;;  %s560_s23 = scalar_lea.vmem [#allocation2], %s410_s22  ;;  %s424_s12 = sshll.u32 (%p527_p4), %s515_s15, 4 }
  0x16   : > { %v198_v7 = vcombine.high %v172_v6, %v172_v6  ;;  %s323_s26 = scalar_lea.vmem (%p527_p4), %s597_s3, %s424_s12 }
  0x18   : > { %413 = vmatprep.subr.msk.mxu0 %vm212_vm0, %v198_v7  ;;  %425 = vmatprep.subr.msk.mxu1 %vm212_vm0, %v198_v7 }
  0x19   : > { %414 = vmatpush1.msk.msra.mxu0 %vm212_vm0, %v172_v6  ;;  %426 = vmatpush1.msk.msra.mxu1 %vm212_vm0, %v172_v6 }
  0x1a   : > { %415 = vmatmul.mubr.msk.f32.vlgmr.msra.gmra.mrb[0].mxu0 %vm199_vm1, %v168_v8  ;;  %417 = vmatmul.mubr.msk.f32.vlgmr.msra.gmra.mrb[0].mxu1 %vm199_vm1, %v170_v9 }
  0x1b   : > { %287 = vmatprep.mubr.f32.mxu0 %v480_v0  ;;  %299 = vmatprep.mubr.f32.mxu1 %v480_v0 }
  0x1e   : > { %416 = vmatmul.mubr.msk.f32.gmra.mrb[2].mxu0 %vm199_vm1, %v169_v10  ;;  %418 = vmatmul.mubr.msk.f32.gmra.mrb[2].mxu1 %vm199_vm1, %v171_v11 }
  0x8c   : > { %v190_v12 = vpop.permute.xlu1 %189  ;;  %v180_v13 = vpop.permute.xlu0 %179 }
  0x90   : > { %v195_v22 = vpop.permute.xlu1 %194  ;;  %v185_v23 = vpop.permute.xlu0 %184 }
  0xed   : > { %v283_v14 = vpop.f32.mrb[0].mxu0  ;;  %v295_v15 = vpop.f32.mrb[0].mxu1 }
  0xee   : > { %v284_v16 = vadd.f32 %v283_v14, %v180_v13  ;;  %v296_v17 = vadd.f32 %v295_v15, %v190_v12  ;;  %v285_v18 = vpop.f32.mrb[1].mxu0  ;;  %v297_v19 = vpop.f32.mrb[1].mxu1 }
  0xef   : > { %v286_v20 = vadd.f32 %v285_v18, %v180_v13  ;;  %v298_v21 = vadd.f32 %v297_v19, %v190_v12  ;;  %320 = sbr.rel (!%p527_p4) target bundleno = 255 (0xff), region = 36 }
  0xf0   : > { %306 = vst [vmem:[%s560_s23] sm:$0xff] %v284_v16  ;;  %310 = vst [vmem:[%s560_s23 + $0x20] sm:$0xff] %v296_v17 }
  0xf1   : > { %307 = vst [vmem:[%s560_s23 + $0x8] sm:$0xff] %v286_v20  ;;  %311 = vst [vmem:[%s560_s23 + $0x28] sm:$0xff] %v298_v21  ;;  %v289_v24 = vpop.f32.mrb[2].mxu0  ;;  %v301_v25 = vpop.f32.mrb[2].mxu1 }
  0xf2   : > { %v290_v26 = vadd.f32 %v289_v24, %v185_v23  ;;  %v302_v27 = vadd.f32 %v301_v25, %v195_v22  ;;  %v291_v28 = vpop.f32.mrb[3].mxu0  ;;  %v303_v29 = vpop.f32.mrb[3].mxu1 }
  0xf3   : > { %v292_v30 = vadd.f32 %v291_v28, %v185_v23  ;;  %v304_v31 = vadd.f32 %v303_v29, %v195_v22 }
  0xf4   : > { %308 = vst [vmem:[%s560_s23 + $0x10] sm:$0xff] %v290_v26  ;;  %312 = vst [vmem:[%s560_s23 + $0x30] sm:$0xff] %v302_v27 }
  0xf5   : > { %309 = vst [vmem:[%s560_s23 + $0x18] sm:$0xff] %v292_v30  ;;  %313 = vst [vmem:[%s560_s23 + $0x38] sm:$0xff] %v304_v31 }
  0xf7   : > { %v336_v32 = vld [vmem:[%s560_s23] sm:$0xff] }
  0xf8   : > { %v338_v33 = vld [vmem:[%s560_s23 + $0x8] sm:$0xff]  ;;  %v344_v36 = vld [vmem:[%s560_s23 + $0x20] sm:$0xff]  ;;  %337 = vst [vmem:[%s323_s26] sm:$0xff] %v336_v32 }
  0xf9   : > { %v346_v37 = vld [vmem:[%s560_s23 + $0x28] sm:$0xff]  ;;  %339 = vst [vmem:[%s323_s26 + $0x8] sm:$0xff] %v338_v33  ;;  %345 = vst [vmem:[%s323_s26 + $0x40] sm:$0xff] %v344_v36 }
  0xfa   : > { %347 = vst [vmem:[%s323_s26 + $0x48] sm:$0xff] %v346_v37 }
  0xfb   : > { %v340_v34 = vld [vmem:[%s560_s23 + $0x10] sm:$0xff] }
  0xfc   : > { %v342_v35 = vld [vmem:[%s560_s23 + $0x18] sm:$0xff]  ;;  %341 = vst [vmem:[%s323_s26 + $0x20] sm:$0xff] %v340_v34  ;;  %v348_v38 = vld [vmem:[%s560_s23 + $0x30] sm:$0xff] }
  0xfd   : > { %343 = vst [vmem:[%s323_s26 + $0x28] sm:$0xff] %v342_v35  ;;  %v350_v39 = vld [vmem:[%s560_s23 + $0x38] sm:$0xff]  ;;  %349 = vst [vmem:[%s323_s26 + $0x60] sm:$0xff] %v348_v38 }
  0xfe   : > { %351 = vst [vmem:[%s323_s26 + $0x68] sm:$0xff] %v350_v39 }
  0xff PF: > { %p10_p8 = scmp.ge.s32.totalorder %s517_s16, 4   ;;  %s599_s12 = smov %s474_s13 }
 0x100   : > { %s600_s13 = smov %s525_s19  ;;  %s601_s14 = smov %s517_s16 }
 0x101   :  { %12 = sbr.rel (!%p10_p8) target bundleno = 2 (0x2), region = 85 }

</bundles_post_ra>
